<compile_context>
chip_gen: v7x
topology: tpu7x:2x2x1
jax: 0.10.0
libtpu: 0.0.40
codegen_flags: <defaults>
</compile_context>

<pallas_src>
from functools import partial

import jax
import jax.numpy as jnp
from jax.experimental import pallas as pl
from jax.experimental.pallas import tpu as pltpu

_LANE = 128  # vreg lane width


def _round_up(x, m):
    return (x + m - 1) // m * m


def _siamese_mlp_kernel(xm_ref, xc_ref, w1_ref, b1_ref, w2_ref, b2_ref,
                        om_ref, oc_ref):
    # xm/xc: [B, D]   f32        w1: [D, HID]  bf16    b1: [1, HID] f32
    # h:     [B, HID] f32        w2: [HID, Op] bf16    b2: [1, Op]  f32
    # om/oc: [B, Op]  f32   (Op = 128-lane padded output width)
    w1 = w1_ref[...]
    b1 = b1_ref[...]
    w2 = w2_ref[...]
    b2 = b2_ref[...]

    def head(x_f32):
        # f32 -> bf16 cast on the VPU (free at this size); f32 MXU accumulation.
        h = jnp.dot(x_f32.astype(jnp.bfloat16), w1,
                    preferred_element_type=jnp.float32)
        h = jnp.maximum(h + b1, 0.0)                       # bias + ReLU in f32
        out = jnp.dot(h.astype(jnp.bfloat16), w2,
                      preferred_element_type=jnp.float32)
        return out + b2

    # Shared weights stay resident in VMEM; both views run in one kernel step.
    om_ref[...] = head(xm_ref[...])
    oc_ref[...] = head(xc_ref[...])


def prepare_params(w1, b1, w2, b2):
    """Cast the shared head's params once.

    Only the OUTPUT side is zero-padded to 128 lanes (unmasked stores); the
    hidden width stays unpadded to keep w1 (the dominant HBM bytes) minimal.
    """
    D, HID = w1.shape
    _, OUT = w2.shape
    Op = _round_up(OUT, _LANE)
    w1b = w1.astype(jnp.bfloat16)                              # [D, HID]
    b1f = b1.astype(jnp.float32).reshape(1, HID)               # [1, HID]
    w2p = jnp.zeros((HID, Op), jnp.bfloat16).at[:, :OUT].set(
        w2.astype(jnp.bfloat16))                               # [HID, Op]
    b2p = jnp.zeros((1, Op), jnp.float32).at[:, :OUT].set(
        b2.astype(jnp.float32))                                # [1, Op]
    return (w1b, b1f, w2p, b2p, OUT)


@partial(jax.jit, static_argnames=("out_dim",))
def _fused_forward(x_mlo, x_cc, w1, b1, w2, b2, *, out_dim):
    B = x_mlo.shape[0]
    D = w1.shape[0]
    Op = w2.shape[1]

    # Free reshape of contiguous NCHW -> [B, D]; no copy / cast in the wrapper.
    xm = x_mlo.reshape(B, D)
    xc = x_cc.reshape(B, D)

    vmem = pl.BlockSpec(memory_space=pltpu.MemorySpace.VMEM)  # whole array in VMEM
    om, oc = pl.pallas_call(
        _siamese_mlp_kernel,
        out_shape=(jax.ShapeDtypeStruct((B, Op), jnp.float32),
                   jax.ShapeDtypeStruct((B, Op), jnp.float32)),
        in_specs=[vmem, vmem, vmem, vmem, vmem, vmem],
        out_specs=(vmem, vmem),
    )(xm, xc, w1, b1, w2, b2)

    return om[:, :out_dim], oc[:, :out_dim]


def forward(x_mlo, x_cc, prepared_params):
    """Siamese forward: one fused single-step kernel over both views."""
    w1b, b1f, w2p, b2p, out_dim = prepared_params
    return _fused_forward(x_mlo, x_cc, w1b, b1f, w2p, b2p, out_dim=out_dim)


if __name__ == "__main__":
    # Small shapes consistent with an NCHW image model.
    B, C, H, W = 2, 4, 16, 16
    D = C * H * W          # 1024 flattened features
    HID = 32               # hidden width of the shared head (kept unpadded)
    OUT = 8                # prediction width (padded to 128 lanes in-kernel)

    key = jax.random.PRNGKey(0)
    k1, k2, k3, k4, k5, k6 = jax.random.split(key, 6)

    # Deterministic shared parameters (synthetic, not a checkpoint load).
    w1 = jax.random.normal(k1, (D, HID), dtype=jnp.float32) * 0.02
    b1 = jax.random.normal(k2, (1, HID), dtype=jnp.float32) * 0.01
    w2 = jax.random.normal(k3, (HID, OUT), dtype=jnp.float32) * 0.02
    b2 = jax.random.normal(k4, (1, OUT), dtype=jnp.float32) * 0.01

    # Two input views (e.g. MLO / CC), NCHW like PyTorch.
    x_mlo = jax.random.normal(k5, (B, C, H, W), dtype=jnp.float32)
    x_cc = jax.random.normal(k6, (B, C, H, W), dtype=jnp.float32)

    prepared = prepare_params(w1, b1, w2, b2)
    pred_mlo, pred_cc = forward(x_mlo, x_cc, prepared)
    jax.block_until_ready((pred_mlo, pred_cc))

    assert pred_mlo.shape == (B, OUT) and pred_cc.shape == (B, OUT)

    # Reference matching the kernel's mixed precision (bf16 matmuls, f32 acc).
    def ref_bf16(x):
        xb = x.reshape(B, -1).astype(jnp.bfloat16)
        hb = jnp.dot(xb, w1.astype(jnp.bfloat16),
                     preferred_element_type=jnp.float32) + b1
        hb = jnp.maximum(hb, 0.0)
        return jnp.dot(hb.astype(jnp.bfloat16), w2.astype(jnp.bfloat16),
                       preferred_element_type=jnp.float32) + b2

    # Pure f32 reference of the same sub-model (looser tolerance, bf16 MXU ops).
    def ref_f32(x):
        h32 = jnp.maximum(x.reshape(B, -1) @ w1 + b1, 0.0)
        return h32 @ w2 + b2

    assert jnp.allclose(pred_mlo, ref_bf16(x_mlo), atol=5e-3, rtol=1e-2)
    assert jnp.allclose(pred_cc, ref_bf16(x_cc), atol=5e-3, rtol=1e-2)
    assert jnp.allclose(pred_mlo, ref_f32(x_mlo), atol=5e-2, rtol=5e-2)
    assert jnp.allclose(pred_cc, ref_f32(x_cc), atol=5e-2, rtol=5e-2)

    print("KERNEL_OK")
</pallas_src>

<mosaic_0001>
module attributes {stable_mosaic.version = 11 : i64} {
  func.func @_siamese_mlp_kernel(%arg0: memref<2x1024xf32, #tpu.memory_space<vmem>>, %arg1: memref<2x1024xf32, #tpu.memory_space<vmem>>, %arg2: memref<1024x32xbf16, #tpu.memory_space<vmem>>, %arg3: memref<1x32xf32, #tpu.memory_space<vmem>>, %arg4: memref<32x128xbf16, #tpu.memory_space<vmem>>, %arg5: memref<1x128xf32, #tpu.memory_space<vmem>>, %arg6: memref<2x128xf32, #tpu.memory_space<vmem>>, %arg7: memref<2x128xf32, #tpu.memory_space<vmem>>) attributes {dimension_semantics = [], scalar_prefetch = 0 : i64, scratch_operands = 0 : i64, tpu.core_type = #tpu.core_type<tc>} {
    %c0 = arith.constant 0 : index
    %c0_0 = arith.constant 0 : index
    %0 = vector.load %arg2[%c0, %c0_0] : memref<1024x32xbf16, #tpu.memory_space<vmem>>, vector<1024x32xbf16>
    %c0_1 = arith.constant 0 : index
    %c0_2 = arith.constant 0 : index
    %1 = vector.load %arg3[%c0_1, %c0_2] : memref<1x32xf32, #tpu.memory_space<vmem>>, vector<1x32xf32>
    %c0_3 = arith.constant 0 : index
    %c0_4 = arith.constant 0 : index
    %2 = vector.load %arg4[%c0_3, %c0_4] : memref<32x128xbf16, #tpu.memory_space<vmem>>, vector<32x128xbf16>
    %c0_5 = arith.constant 0 : index
    %c0_6 = arith.constant 0 : index
    %3 = vector.load %arg5[%c0_5, %c0_6] : memref<1x128xf32, #tpu.memory_space<vmem>>, vector<1x128xf32>
    %c0_7 = arith.constant 0 : index
    %c0_8 = arith.constant 0 : index
    %4 = vector.load %arg0[%c0_7, %c0_8] : memref<2x1024xf32, #tpu.memory_space<vmem>>, vector<2x1024xf32>
    %5 = arith.truncf %4 : vector<2x1024xf32> to vector<2x1024xbf16>
    %cst = arith.constant dense<0.000000e+00> : vector<2x32xf32>
    %6 = tpu.matmul %5, %0, %cst {dimension_numbers = #tpu.dot_dimension_numbers<[1], [0], [0], [1], [0, 0, 1, 1], [], []>} : vector<2x1024xbf16>, vector<1024x32xbf16>, vector<2x32xf32> -> vector<2x32xf32>
    %7 = vector.broadcast %1 : vector<1x32xf32> to vector<2x32xf32>
    %8 = arith.addf %6, %7 : vector<2x32xf32>
    %cst_9 = arith.constant 0.000000e+00 : f32
    %9 = vector.broadcast %cst_9 : f32 to vector<2x32xf32>
    %10 = arith.maximumf %8, %9 : vector<2x32xf32>
    %11 = arith.truncf %10 : vector<2x32xf32> to vector<2x32xbf16>
    %cst_10 = arith.constant dense<0.000000e+00> : vector<2x128xf32>
    %12 = tpu.matmul %11, %2, %cst_10 {dimension_numbers = #tpu.dot_dimension_numbers<[1], [0], [0], [1], [0, 0, 1, 1], [], []>} : vector<2x32xbf16>, vector<32x128xbf16>, vector<2x128xf32> -> vector<2x128xf32>
    %13 = vector.broadcast %3 : vector<1x128xf32> to vector<2x128xf32>
    %14 = arith.addf %12, %13 : vector<2x128xf32>
    %c0_11 = arith.constant 0 : index
    %c0_12 = arith.constant 0 : index
    %15 = vector.load %arg6[%c0_11, %c0_12] : memref<2x128xf32, #tpu.memory_space<vmem>>, vector<2x128xf32>
    tpu.vector_store %arg6[%c0_11, %c0_12], %14 {strides = array<i32>} : memref<2x128xf32, #tpu.memory_space<vmem>>, vector<2x128xf32>,
    %c0_13 = arith.constant 0 : index
    %c0_14 = arith.constant 0 : index
    %16 = vector.load %arg1[%c0_13, %c0_14] : memref<2x1024xf32, #tpu.memory_space<vmem>>, vector<2x1024xf32>
    %17 = arith.truncf %16 : vector<2x1024xf32> to vector<2x1024xbf16>
    %cst_15 = arith.constant dense<0.000000e+00> : vector<2x32xf32>
    %18 = tpu.matmul %17, %0, %cst_15 {dimension_numbers = #tpu.dot_dimension_numbers<[1], [0], [0], [1], [0, 0, 1, 1], [], []>} : vector<2x1024xbf16>, vector<1024x32xbf16>, vector<2x32xf32> -> vector<2x32xf32>
    %19 = vector.broadcast %1 : vector<1x32xf32> to vector<2x32xf32>
    %20 = arith.addf %18, %19 : vector<2x32xf32>
    %cst_16 = arith.constant 0.000000e+00 : f32
    %21 = vector.broadcast %cst_16 : f32 to vector<2x32xf32>
    %22 = arith.maximumf %20, %21 : vector<2x32xf32>
    %23 = arith.truncf %22 : vector<2x32xf32> to vector<2x32xbf16>
    %cst_17 = arith.constant dense<0.000000e+00> : vector<2x128xf32>
    %24 = tpu.matmul %23, %2, %cst_17 {dimension_numbers = #tpu.dot_dimension_numbers<[1], [0], [0], [1], [0, 0, 1, 1], [], []>} : vector<2x32xbf16>, vector<32x128xbf16>, vector<2x128xf32> -> vector<2x128xf32>
    %25 = vector.broadcast %3 : vector<1x128xf32> to vector<2x128xf32>
    %26 = arith.addf %24, %25 : vector<2x128xf32>
    %c0_18 = arith.constant 0 : index
    %c0_19 = arith.constant 0 : index
    %27 = vector.load %arg7[%c0_18, %c0_19] : memref<2x128xf32, #tpu.memory_space<vmem>>, vector<2x128xf32>
    tpu.vector_store %arg7[%c0_18, %c0_19], %26 {strides = array<i32>} : memref<2x128xf32, #tpu.memory_space<vmem>>, vector<2x128xf32>,
    return
  }
}

</mosaic_0001>

<bundles_post_ra>
// kernel: _fused_forward.1
= control target key start
LH: loop header
LB: loop body
LE: loop exit
PB: predicated region body
PF: predicated region fallthrough
CT: control target
= control target key end

     0   :  { %13 = vsyncpa [#allocation3], 0  ;;  %v170_v28 = vlaneseq  ;;  %v1510_v36 = vmov 1983009808   ;;  %s2069_s0 = inlined_call_operand.vmem [shape: f32[2,1024], index: 0, kind: input, shape index: {}]   ;;  %s2070_s1 = inlined_call_operand.vmem [shape: f32[2,1024], index: 1, kind: input, shape index: {}]   ;;  %s2071_s2 = inlined_call_operand.vmem [shape: bf16[1024,32], index: 2, kind: input, shape index: {}]   ;;  %s2072_s3 = inlined_call_operand.vmem [shape: f32[1,32], index: 3, kind: input, shape index: {}]   ;;  %s2073_s4 = inlined_call_operand.vmem [shape: bf16[32,128], index: 4, kind: input, shape index: {}]   ;;  %s2074_s5 = inlined_call_operand.vmem [shape: f32[1,128], index: 5, kind: input, shape index: {}]   ;;  %s2075_s6 = inlined_call_operand.hbm [shape: f32[2,128], index: 6, kind: output, shape index: {0}]   ;;  %s2076_s7 = inlined_call_operand.hbm [shape: f32[2,128], index: 7, kind: output, shape index: {1}]  }
   0x1   :  { %v1558_v0 = vld [vmem:[%s2071_s2 + $0x40] sm:$0xff]   ;;  %v1581_v4 = vld [vmem:[%s2071_s2 + $0x48] sm:$0xff]   ;;  %v1605_v8 = vld [vmem:[%s2071_s2 + $0x50] sm:$0xff]   ;;  %v168_v37 = vunpack.c.l.s4 %v1510_v36 }
   0x2   :  { %v1563_v1 = vld [vmem:[%s2071_s2 + $0xc0] sm:$0xff]   ;;  %1189 = vmatprep.subr.bf16.mxu0 %v1558_v0  ;;  %v1587_v5 = vld [vmem:[%s2071_s2 + $0xc8] sm:$0xff]   ;;  %v1611_v9 = vld [vmem:[%s2071_s2 + $0xd0] sm:$0xff]   ;;  %v171_v33 = vshrl.u32 %v170_v28, 7 }
   0x3   :  { %v1569_v2 = vld [vmem:[%s2071_s2] sm:$0xff]   ;;  %1211 = vmatprep.subr.bf16.mxu1 %v1563_v1  ;;  %v1593_v6 = vld [vmem:[%s2071_s2 + $0x8] sm:$0xff]   ;;  %v1617_v10 = vld [vmem:[%s2071_s2 + $0x10] sm:$0xff]   ;;  %v169_v39 = vunpack.c.0.s8 %v168_v37 }
   0x4   :  { %v1575_v3 = vld [vmem:[%s2071_s2 + $0x80] sm:$0xff]   ;;  %1190 = vmatpush3.bf16.msra.mxu0 %v1569_v2  ;;  %v1599_v7 = vld [vmem:[%s2071_s2 + $0x88] sm:$0xff]   ;;  %v1623_v11 = vld [vmem:[%s2071_s2 + $0x90] sm:$0xff]  }
   0x5   :  { %1212 = vmatpush3.bf16.msra.mxu1 %v1575_v3  ;;  %1191 = vmatprep.subr.bf16.mxu0 %v1581_v4  ;;  %v1629_v12 = vld [vmem:[%s2071_s2 + $0x58] sm:$0xff]   ;;  %v1653_v16 = vld [vmem:[%s2071_s2 + $0x60] sm:$0xff]   ;;  %v1677_v20 = vld [vmem:[%s2071_s2 + $0x68] sm:$0xff]   ;;  %v1762_v41 = vsub.s32 %v169_v39, %v171_v33 }
   0x6   :  { %1213 = vmatprep.subr.bf16.mxu1 %v1587_v5  ;;  %v1635_v13 = vld [vmem:[%s2071_s2 + $0xd8] sm:$0xff]   ;;  %v1659_v17 = vld [vmem:[%s2071_s2 + $0xe0] sm:$0xff]   ;;  %v1683_v21 = vld [vmem:[%s2071_s2 + $0xe8] sm:$0xff]  }
   0x7   :  { %v1641_v14 = vld [vmem:[%s2071_s2 + $0x18] sm:$0xff]   ;;  %v1665_v18 = vld [vmem:[%s2071_s2 + $0x20] sm:$0xff]   ;;  %v1689_v22 = vld [vmem:[%s2071_s2 + $0x28] sm:$0xff]  }
   0x8   :  { %1192 = vmatpush3.bf16.msra.mxu0 %v1593_v6  ;;  %v1647_v15 = vld [vmem:[%s2071_s2 + $0x98] sm:$0xff]   ;;  %v1671_v19 = vld [vmem:[%s2071_s2 + $0xa0] sm:$0xff]   ;;  %v1695_v23 = vld [vmem:[%s2071_s2 + $0xa8] sm:$0xff]  }
   0x9   :  { %1214 = vmatpush3.bf16.msra.mxu1 %v1599_v7  ;;  %1193 = vmatprep.subr.bf16.mxu0 %v1605_v8  ;;  %v1701_v24 = vld [vmem:[%s2071_s2 + $0x70] sm:$0xff]   ;;  %v1725_v29 = vld [vmem:[%s2071_s2 + $0x78] sm:$0xff]   ;;  %v162_v34 = vld [vmem:[%s2069_s0] sm:$0xff] }
   0xa   :  { %1215 = vmatprep.subr.bf16.mxu1 %v1611_v9  ;;  %v1707_v25 = vld [vmem:[%s2071_s2 + $0xf0] sm:$0xff]   ;;  %v1731_v30 = vld [vmem:[%s2071_s2 + $0xf8] sm:$0xff]   ;;  %v1752_v35 = vld [vmem:[%s2071_s2 + $0x140] sm:$0xff]   ;;  %v166_v40 = vcombine.high %v162_v34, %v162_v34  ;;  %v173_v42 = vrot.slane %v162_v34, %v1762_v41 }
   0xb   :  { %v1713_v26 = vld [vmem:[%s2071_s2 + $0x30] sm:$0xff]   ;;  %v1737_v31 = vld [vmem:[%s2071_s2 + $0x38] sm:$0xff]   ;;  %v1759_v38 = vld [vmem:[%s2071_s2 + $0x1c0] sm:$0xff]  }
   0xc   :  { %1194 = vmatpush3.bf16.msra.mxu0 %v1617_v10  ;;  %v1719_v27 = vld [vmem:[%s2071_s2 + $0xb0] sm:$0xff]   ;;  %v1743_v32 = vld [vmem:[%s2071_s2 + $0xb8] sm:$0xff]   ;;  %v180_v43 = vrot.slane %v166_v40, %v1762_v41  ;;  %v181_v44 = vcombine.high %v173_v42, %v173_v42  ;;  %v1769_v46 = vld [vmem:[%s2071_s2 + $0x100] sm:$0xff]   ;;  %v208_v47 = vpack.c.bf16 %v173_v42, %v173_v42 }
   0xd   :  { %1216 = vmatpush3.bf16.msra.mxu1 %v1623_v11  ;;  %1195 = vmatprep.subr.bf16.mxu0 %v1629_v12  ;;  %v1774_v49 = vld [vmem:[%s2071_s2 + $0x180] sm:$0xff]   ;;  %v1779_v52 = vld [vmem:[%s2071_s2 + $0x148] sm:$0xff]   ;;  %v1801_v56 = vld [vmem:[%s2071_s2 + $0x150] sm:$0xff]  }
   0xe   :  { %1217 = vmatprep.subr.bf16.mxu1 %v1635_v13  ;;  %v182_v45 = vcombine.high %v180_v43, %v180_v43  ;;  %v210_v48 = vpack.c.bf16 %v180_v43, %v180_v43  ;;  %v209_v50 = vpack.c.bf16 %v181_v44, %v181_v44  ;;  %v1784_v53 = vld [vmem:[%s2071_s2 + $0x1c8] sm:$0xff]   ;;  %v1808_v57 = vld [vmem:[%s2071_s2 + $0x1d0] sm:$0xff]   ;;  %v1825_v60 = vld [vmem:[%s2071_s2 + $0x158] sm:$0xff]  }
   0xf   :  { %v1789_v54 = vld [vmem:[%s2071_s2 + $0x108] sm:$0xff]   ;;  %v1813_v58 = vld [vmem:[%s2071_s2 + $0x110] sm:$0xff]   ;;  %v1832_v61 = vld [vmem:[%s2071_s2 + $0x1d8] sm:$0xff]  }
  0x10   :  { %1196 = vmatpush3.bf16.msra.mxu0 %v1641_v14  ;;  %v211_v51 = vpack.c.bf16 %v182_v45, %v182_v45  ;;  %638 = vmatprep.mubr.bf16.mxu0 %v209_v50  ;;  %v1794_v55 = vld [vmem:[%s2071_s2 + $0x188] sm:$0xff]   ;;  %v1818_v59 = vld [vmem:[%s2071_s2 + $0x190] sm:$0xff]   ;;  %2086 = vst [vmem:[#allocation9_spill] sm:$0xff] %v1832_v61  ;;  %v1837_v62 = vld [vmem:[%s2071_s2 + $0x118] sm:$0xff]  }
  0x11   :  { %1218 = vmatpush3.bf16.msra.mxu1 %v1647_v15  ;;  %1197 = vmatprep.subr.bf16.mxu0 %v1653_v16  ;;  %2085 = vst [vmem:[#allocation8_spill] sm:$0xff] %v1818_v59  ;;  %v1842_v63 = vld [vmem:[%s2071_s2 + $0x198] sm:$0xff]   ;;  %v1849_v28 = vld [vmem:[%s2071_s2 + $0x160] sm:$0xff]   ;;  %v1873_v37 = vld [vmem:[%s2071_s2 + $0x168] sm:$0xff]  }
  0x12   :  { %1219 = vmatprep.subr.bf16.mxu1 %v1659_v17  ;;  %678 = vmatprep.mubr.bf16.mxu1 %v211_v51  ;;  %2087 = vst [vmem:[#allocation10_spill] sm:$0xff] %v1842_v63  ;;  %v1856_v33 = vld [vmem:[%s2071_s2 + $0x1e0] sm:$0xff]   ;;  %v1880_v39 = vld [vmem:[%s2071_s2 + $0x1e8] sm:$0xff]   ;;  %v1897_v43 = vld [vmem:[%s2071_s2 + $0x170] sm:$0xff]  }
  0x13   :  { %2088 = vst [vmem:[#allocation11_spill] sm:$0xff] %v1856_v33  ;;  %v1861_v34 = vld [vmem:[%s2071_s2 + $0x120] sm:$0xff]   ;;  %2090 = vst [vmem:[#allocation13_spill] sm:$0xff] %v1880_v39  ;;  %v1885_v40 = vld [vmem:[%s2071_s2 + $0x128] sm:$0xff]  }
  0x14   :  { %1198 = vmatpush3.bf16.msra.mxu0 %v1665_v18  ;;  %v1866_v36 = vld [vmem:[%s2071_s2 + $0x1a0] sm:$0xff]   ;;  %v1890_v42 = vld [vmem:[%s2071_s2 + $0x1a8] sm:$0xff]   ;;  %v1904_v44 = vld [vmem:[%s2071_s2 + $0x1f0] sm:$0xff]  }
  0x15   :  { %1220 = vmatpush3.bf16.msra.mxu1 %v1671_v19  ;;  %1199 = vmatprep.subr.bf16.mxu0 %v1677_v20  ;;  %2089 = vst [vmem:[#allocation12_spill] sm:$0xff] %v1866_v36  ;;  %2091 = vst [vmem:[#allocation14_spill] sm:$0xff] %v1890_v42  ;;  %v163_v45 = vld [vmem:[%s2069_s0 + $0x8] sm:$0xff] }
  0x16   :  { %1221 = vmatprep.subr.bf16.mxu1 %v1683_v21  ;;  %2092 = vst [vmem:[#allocation15_spill] sm:$0xff] %v1904_v44 }
  0x18   :  { %1200 = vmatpush3.bf16.msra.mxu0 %v1689_v22 }
  0x19   :  { %1222 = vmatpush3.bf16.msra.mxu1 %v1695_v23  ;;  %1201 = vmatprep.subr.bf16.mxu0 %v1701_v24 }
  0x1a   :  { %1223 = vmatprep.subr.bf16.mxu1 %v1707_v25 }
  0x1c   :  { %1202 = vmatpush3.bf16.msra.mxu0 %v1713_v26 }
  0x1d   :  { %1224 = vmatpush3.bf16.msra.mxu1 %v1719_v27  ;;  %1203 = vmatprep.subr.bf16.mxu0 %v1725_v29 }
  0x1e   :  { %1225 = vmatprep.subr.bf16.mxu1 %v1731_v30 }
  0x20   :  { %1204 = vmatpush3.bf16.msra.mxu0 %v1737_v31 }
  0x21   :  { %1226 = vmatpush3.bf16.msra.mxu1 %v1743_v32  ;;  %1233 = vmatprep.subr.bf16.mxu0 %v1752_v35 }
  0x22   :  { %1255 = vmatprep.subr.bf16.mxu1 %v1759_v38 }
  0x23   :  { %639 = vmatmul.mubr.bf16.vlgmr.msra.gmra.mrb[0].mxu0 %v208_v47  ;;  %v190_v47 = vrot.slane %v163_v45, %v1762_v41 }
  0x24   :  { %679 = vmatmul.mubr.bf16.vlgmr.msra.gmra.mrb[0].mxu1 %v210_v48  ;;  %1234 = vmatpush3.bf16.msra.mxu0 %v1769_v46  ;;  %v183_v48 = vcombine.high %v163_v45, %v163_v45 }
  0x25   :  { %1256 = vmatpush3.bf16.msra.mxu1 %v1774_v49  ;;  %1235 = vmatprep.subr.bf16.mxu0 %v1779_v52 }
  0x26   :  { %1257 = vmatprep.subr.bf16.mxu1 %v1784_v53 }
  0x28   :  { %1236 = vmatpush3.bf16.msra.mxu0 %v1789_v54 }
  0x29   :  { %1258 = vmatpush3.bf16.msra.mxu1 %v1794_v55  ;;  %1237 = vmatprep.subr.bf16.mxu0 %v1801_v56 }
  0x2a   :  { %1259 = vmatprep.subr.bf16.mxu1 %v1808_v57 }
  0x2c   :  { %1238 = vmatpush3.bf16.msra.mxu0 %v1813_v58 }
  0x2d   :  { %1260 = vmatpush3.bf16.msra.mxu1 %v1818_v59  ;;  %1239 = vmatprep.subr.bf16.mxu0 %v1825_v60 }
  0x2e   :  { %1261 = vmatprep.subr.bf16.mxu1 %v1832_v61 }
  0x30   :  { %1240 = vmatpush3.bf16.msra.mxu0 %v1837_v62 }
  0x31   :  { %1262 = vmatpush3.bf16.msra.mxu1 %v1842_v63  ;;  %1241 = vmatprep.subr.bf16.mxu0 %v1849_v28 }
  0x32   :  { %1263 = vmatprep.subr.bf16.mxu1 %v1856_v33 }
  0x34   :  { %1242 = vmatpush3.bf16.msra.mxu0 %v1861_v34 }
  0x35   :  { %1264 = vmatpush3.bf16.msra.mxu1 %v1866_v36  ;;  %1243 = vmatprep.subr.bf16.mxu0 %v1873_v37 }
  0x36   :  { %1265 = vmatprep.subr.bf16.mxu1 %v1880_v39 }
  0x37   :  { %14 = vsyncpa [#allocation5], 0  ;;  %v1915_v50 = vld [vmem:[%s2071_s2 + $0x130] sm:$0xff]   ;;  %v198_v39 = vcombine.high %v190_v47, %v190_v47  ;;  %v197_v36 = vrot.slane %v183_v48, %v1762_v41  ;;  %v1928_v45 = vld [vmem:[%s2071_s2 + $0x178] sm:$0xff]   ;;  %vm1512_vm0 = vmmov 0   ;;  %vm786_vm1 = vcmask 261120  }
  0x38   :  { %1244 = vmatpush3.bf16.msra.mxu0 %v1885_v40  ;;  %v1920_v51 = vld [vmem:[%s2071_s2 + $0x1b0] sm:$0xff]   ;;  %v1940_v48 = vld [vmem:[%s2071_s2 + $0x138] sm:$0xff]  }
  0x39   :  { %1266 = vmatpush3.bf16.msra.mxu1 %v1890_v42  ;;  %1245 = vmatprep.subr.bf16.mxu0 %v1897_v43  ;;  %v1933_v42 = vld [vmem:[%s2071_s2 + $0x1f8] sm:$0xff]   ;;  %v213_v33 = vpack.c.bf16 %v198_v39, %v198_v39  ;;  %v199_v63 = vcombine.high %v197_v36, %v197_v36  ;;  %v212_v39 = vpack.c.bf16 %v190_v47, %v190_v47 }
  0x3a   :  { %1267 = vmatprep.subr.bf16.mxu1 %v1904_v44  ;;  %v1945_v44 = vld [vmem:[%s2071_s2 + $0x1b8] sm:$0xff]   ;;  %v214_v59 = vpack.c.bf16 %v197_v36, %v197_v36 }
  0x3b   :  { %v215_v61 = vpack.c.bf16 %v199_v63, %v199_v63  ;;  %718 = vmatprep.mubr.bf16.mxu0 %v213_v33 }
  0x3c   :  { %1246 = vmatpush3.bf16.msra.mxu0 %v1915_v50 }
  0x3d   :  { %1268 = vmatpush3.bf16.msra.mxu1 %v1920_v51  ;;  %1247 = vmatprep.subr.bf16.mxu0 %v1928_v45 }
  0x3e   :  { %1269 = vmatprep.subr.bf16.mxu1 %v1933_v42  ;;  %758 = vmatprep.mubr.bf16.mxu1 %v215_v61 }
  0x40   :  { %1248 = vmatpush3.bf16.msra.mxu0 %v1940_v48 }
  0x41   :  { %1270 = vmatpush3.bf16.msra.mxu1 %v1945_v44 }
  0x42   :  { %1280 = vmatprep.subr.bf16.mxu1 %v1558_v0  ;;  %v1458_v0 = vld [vmem:[%s2073_s4] sm:$0xff]  }
  0x43   :  { %719 = vmatmul.mubr.bf16.vlgmr.msra.gmra.mrb[4].mxu0 %v212_v39 }
  0x44   :  { %759 = vmatmul.mubr.bf16.vlgmr.msra.gmra.mrb[4].mxu1 %v214_v59 }
  0x45   :  { %1281 = vmatpush3.bf16.msra.mxu1 %v1569_v2  ;;  %v1511_v2 = vmov 0.0  }
  0x46   :  { %1282 = vmatprep.subr.bf16.mxu1 %v1581_v4  ;;  %1371 = vmatprep.subr.bf16.mxu0 %v1511_v2  ;;  %v1459_v4 = vld [vmem:[%s2073_s4 + $0x8] sm:$0xff]  }
  0x47   :  { %1372 = vmatpush3.bf16.msra.mxu0 %v1458_v0  ;;  %1375 = vmatprep.mubr.msk.bf16.mxu0 %vm1512_vm0, %v1511_v2 }
  0x48   :  { %1373 = vmatprep.subr.bf16.mxu0 %v1511_v2 }
  0x49   :  { %1283 = vmatpush3.bf16.msra.mxu1 %v1593_v6  ;;  %v831_v6 = vld [vmem:[%s2070_s1] sm:$0xff] }
  0x4a   :  { %1284 = vmatprep.subr.bf16.mxu1 %v1605_v8  ;;  %v842_v8 = vrot.slane %v831_v6, %v1762_v41 }
  0x4b   :  { %1374 = vmatpush3.bf16.msra.mxu0 %v1459_v4 }
  0x4c   :  { %1302 = vmatprep.subr.bf16.mxu0 %v1563_v1  ;;  %v832_v1 = vld [vmem:[%s2070_s1 + $0x8] sm:$0xff] }
  0x4d   :  { %1285 = vmatpush3.bf16.msra.mxu1 %v1617_v10  ;;  %v850_v10 = vcombine.high %v842_v8, %v842_v8 }
  0x4e   :  { %1286 = vmatprep.subr.bf16.mxu1 %v1629_v12 }
  0x4f   :  { %v878_v12 = vpack.c.bf16 %v850_v10, %v850_v10 }
  0x51   :  { %1287 = vmatpush3.bf16.msra.mxu1 %v1641_v14  ;;  %v877_v14 = vpack.c.bf16 %v842_v8, %v842_v8  ;;  %917 = vmatprep.mubr.bf16.mxu1 %v878_v12 }
  0x52   :  { %1288 = vmatprep.subr.bf16.mxu1 %v1653_v16  ;;  %v859_v16 = vrot.slane %v832_v1, %v1762_v41 }
  0x55   :  { %1289 = vmatpush3.bf16.msra.mxu1 %v1665_v18  ;;  %v867_v18 = vcombine.high %v859_v16, %v859_v16 }
  0x56   :  { %1290 = vmatprep.subr.bf16.mxu1 %v1677_v20 }
  0x57   :  { %v882_v20 = vpack.c.bf16 %v867_v18, %v867_v18 }
  0x59   :  { %1291 = vmatpush3.bf16.msra.mxu1 %v1689_v22  ;;  %v881_v22 = vpack.c.bf16 %v859_v16, %v859_v16 }
  0x5a   :  { %1292 = vmatprep.subr.bf16.mxu1 %v1701_v24 }
  0x5d   :  { %1293 = vmatpush3.bf16.msra.mxu1 %v1713_v26 }
  0x5e   :  { %1294 = vmatprep.subr.bf16.mxu1 %v1725_v29  ;;  %v2003_v29 = vld [vmem:[%s2072_s3] ss:$0 sm:$0xff] }
  0x61   :  { %1295 = vmatpush3.bf16.msra.mxu1 %v1737_v31 }
  0x62   :  { %1324 = vmatprep.subr.bf16.mxu1 %v1752_v35 }
  0x64   :  { %918 = vmatmul.mubr.bf16.vlgmr.msra.gmra.mrb[8].mxu1 %v877_v14 }
  0x65   :  { %1325 = vmatpush3.bf16.msra.mxu1 %v1769_v46  ;;  %997 = vmatprep.mubr.bf16.mxu1 %v882_v20 }
  0x66   :  { %1326 = vmatprep.subr.bf16.mxu1 %v1779_v52 }
  0x69   :  { %1327 = vmatpush3.bf16.msra.mxu1 %v1789_v54 }
  0x6a   :  { %1328 = vmatprep.subr.bf16.mxu1 %v1801_v56 }
  0x6d   :  { %1329 = vmatpush3.bf16.msra.mxu1 %v1813_v58 }
  0x6e   :  { %1330 = vmatprep.subr.bf16.mxu1 %v1825_v60 }
  0x71   :  { %1331 = vmatpush3.bf16.msra.mxu1 %v1837_v62  ;;  %v835_v62 = vcombine.high %v831_v6, %v831_v6  ;;  %v852_v6 = vcombine.high %v832_v1, %v832_v1 }
  0x72   :  { %1332 = vmatprep.subr.bf16.mxu1 %v1849_v28 }
  0x73   :  { %v849_v36 = vrot.slane %v835_v62, %v1762_v41 }
  0x75   :  { %1333 = vmatpush3.bf16.msra.mxu1 %v1861_v34  ;;  %v851_v39 = vcombine.high %v849_v36, %v849_v36 }
  0x76   :  { %1334 = vmatprep.subr.bf16.mxu1 %v1873_v37 }
  0x79   :  { %1335 = vmatpush3.bf16.msra.mxu1 %v1885_v40 }
  0x7a   :  { %1336 = vmatprep.subr.bf16.mxu1 %v1897_v43 }
  0x7d   :  { %1337 = vmatpush3.bf16.msra.mxu1 %v1915_v50 }
  0x7e   :  { %1338 = vmatprep.subr.bf16.mxu1 %v1928_v45 }
  0x81   :  { %1339 = vmatpush3.bf16.msra.mxu1 %v1940_v48 }
  0x82   :  { %1379 = vmatprep.subr.bf16.mxu1 %v1511_v2 }
  0x84   :  { %998 = vmatmul.mubr.bf16.vlgmr.msra.gmra.mrb[12].mxu1 %v881_v22 }
  0x85   :  { %1380 = vmatpush3.bf16.msra.mxu1 %v1458_v0  ;;  %1383 = vmatprep.mubr.msk.bf16.mxu1 %vm1512_vm0, %v1511_v2 }
  0x86   :  { %1381 = vmatprep.subr.bf16.mxu1 %v1511_v2 }
  0x89   :  { %1382 = vmatpush3.bf16.msra.mxu1 %v1459_v4  ;;  %v880_v4 = vpack.c.bf16 %v851_v39, %v851_v39 }
  0xf6   :  { %v1205_v24 = vpop.f32.mrb[0].mxu0 }
  0xf7   :  { %v1227_v26 = vpop.f32.mrb[0].mxu1  ;;  %v1206_v31 = vpop.f32.mrb[1].mxu0 }
  0xf8   :  { %v1228_v35 = vpop.f32.mrb[1].mxu1  ;;  %v1207_v46 = vadd.f32 %v1206_v31, %v1205_v24  ;;  %v1208_v54 = vpop.f32.mrb[2].mxu0 }
  0xf9   :  { %v1229_v52 = vadd.f32 %v1228_v35, %v1227_v26  ;;  %v1230_v56 = vpop.f32.mrb[2].mxu1  ;;  %v1209_v58 = vpop.f32.mrb[3].mxu0 }
  0xfa   :  { %v1231_v59 = vpop.f32.mrb[3].mxu1  ;;  %v641_v60 = vadd.f32 %v1207_v46, %v2003_v29 }
  0xfc   :  { %v681_v61 = vadd.f32 %v1229_v52, %v641_v60 }
 0x116   :  { %v1249_v63 = vpop.f32.mrb[4].mxu0 }
 0x117   :  { %v1271_v28 = vpop.f32.mrb[4].mxu1  ;;  %v1250_v33 = vpop.f32.mrb[5].mxu0 }
 0x118   :  { %v1272_v34 = vpop.f32.mrb[5].mxu1  ;;  %v1251_v37 = vadd.f32 %v1250_v33, %v1249_v63  ;;  %v1252_v43 = vpop.f32.mrb[6].mxu0 }
 0x119   :  { %v1273_v40 = vadd.f32 %v1272_v34, %v1271_v28  ;;  %v1274_v47 = vpop.f32.mrb[6].mxu1  ;;  %v1253_v50 = vpop.f32.mrb[7].mxu0 }
 0x11a   :  { %v1275_v45 = vpop.f32.mrb[7].mxu1  ;;  %v721_v48 = vadd.f32 %v1251_v37, %v681_v61 }
 0x11c   :  { %v761_v0 = vadd.f32 %v1273_v40, %v721_v48 }
 0x11e   :  { %v766_v2 = vmax.f32 %v761_v0, 0.0 }
 0x120   :  { %v767_v8 = vpack.c.bf16 %v766_v2, %v766_v2 }
 0x122   :  { %1376 = vmatmul.mubr.msk.bf16.vlgmr.msra.gmra.mrb[8].mxu0 %vm786_vm1, %v767_v8 }
 0x123   :  { %1303 = vmatpush3.bf16.msra.mxu0 %v1575_v3  ;;  %957 = vmatprep.mubr.bf16.mxu0 %v880_v4  ;;  %v866_v3 = vrot.slane %v852_v6, %v1762_v41 }
 0x124   :  { %1304 = vmatprep.subr.bf16.mxu0 %v1587_v5 }
 0x125   :  { %v868_v5 = vcombine.high %v866_v3, %v866_v3 }
 0x127   :  { %1305 = vmatpush3.bf16.msra.mxu0 %v1599_v7  ;;  %v879_v7 = vpack.c.bf16 %v849_v36, %v849_v36 }
 0x128   :  { %1306 = vmatprep.subr.bf16.mxu0 %v1611_v9  ;;  %v884_v9 = vpack.c.bf16 %v868_v5, %v868_v5 }
 0x12b   :  { %1307 = vmatpush3.bf16.msra.mxu0 %v1623_v11  ;;  %v2093_v11 = vld [vmem:[#allocation8_spill] sm:$0xff] }
 0x12c   :  { %1308 = vmatprep.subr.bf16.mxu0 %v1635_v13  ;;  %v2094_v13 = vld [vmem:[#allocation9_spill] sm:$0xff] }
 0x12f   :  { %1309 = vmatpush3.bf16.msra.mxu0 %v1647_v15  ;;  %v2095_v15 = vld [vmem:[#allocation10_spill] sm:$0xff] }
 0x130   :  { %1310 = vmatprep.subr.bf16.mxu0 %v1659_v17  ;;  %v2096_v17 = vld [vmem:[#allocation11_spill] sm:$0xff] }
 0x133   :  { %1311 = vmatpush3.bf16.msra.mxu0 %v1671_v19  ;;  %v2097_v19 = vld [vmem:[#allocation12_spill] sm:$0xff] }
 0x134   :  { %1312 = vmatprep.subr.bf16.mxu0 %v1683_v21  ;;  %v2098_v21 = vld [vmem:[#allocation13_spill] sm:$0xff] }
 0x137   :  { %1313 = vmatpush3.bf16.msra.mxu0 %v1695_v23  ;;  %v2099_v23 = vld [vmem:[#allocation14_spill] sm:$0xff] }
 0x138   :  { %1314 = vmatprep.subr.bf16.mxu0 %v1707_v25  ;;  %v2100_v25 = vld [vmem:[#allocation15_spill] sm:$0xff] }
 0x13b   :  { %1315 = vmatpush3.bf16.msra.mxu0 %v1719_v27  ;;  %v883_v27 = vpack.c.bf16 %v866_v3, %v866_v3 }
 0x13c   :  { %1316 = vmatprep.subr.bf16.mxu0 %v1731_v30  ;;  %v1296_v30 = vpop.f32.mrb[8].mxu1 }
 0x13f   :  { %1317 = vmatpush3.bf16.msra.mxu0 %v1743_v32  ;;  %v1297_v32 = vpop.f32.mrb[9].mxu1 }
 0x140   :  { %1346 = vmatprep.subr.bf16.mxu0 %v1759_v38  ;;  %v1298_v38 = vadd.f32 %v1297_v32, %v1296_v30  ;;  %v1299_v41 = vpop.f32.mrb[10].mxu1 }
 0x142   :  { %958 = vmatmul.mubr.bf16.vlgmr.msra.gmra.mrb[12].mxu0 %v879_v7  ;;  %v920_v18 = vadd.f32 %v1298_v38, %v2003_v29 }
 0x143   :  { %1347 = vmatpush3.bf16.msra.mxu0 %v1774_v49  ;;  %1037 = vmatprep.mubr.bf16.mxu0 %v884_v9  ;;  %v1300_v49 = vpop.f32.mrb[11].mxu1 }
 0x144   :  { %1348 = vmatprep.subr.bf16.mxu0 %v1784_v53 }
 0x147   :  { %1349 = vmatpush3.bf16.msra.mxu0 %v1794_v55 }
 0x148   :  { %1350 = vmatprep.subr.bf16.mxu0 %v1808_v57 }
 0x14b   :  { %1351 = vmatpush3.bf16.msra.mxu0 %v2093_v11 }
 0x14c   :  { %1352 = vmatprep.subr.bf16.mxu0 %v2094_v13 }
 0x14f   :  { %1353 = vmatpush3.bf16.msra.mxu0 %v2095_v15 }
 0x150   :  { %1354 = vmatprep.subr.bf16.mxu0 %v2096_v17 }
 0x153   :  { %1355 = vmatpush3.bf16.msra.mxu0 %v2097_v19 }
 0x154   :  { %1356 = vmatprep.subr.bf16.mxu0 %v2098_v21 }
 0x157   :  { %1357 = vmatpush3.bf16.msra.mxu0 %v2099_v23  ;;  %v1340_v53 = vpop.f32.mrb[12].mxu1 }
 0x158   :  { %1358 = vmatprep.subr.bf16.mxu0 %v2100_v25  ;;  %v1341_v55 = vpop.f32.mrb[13].mxu1 }
 0x159   :  { %v1342_v57 = vadd.f32 %v1341_v55, %v1340_v53  ;;  %v1343_v10 = vpop.f32.mrb[14].mxu1 }
 0x15a   :  { %v1344_v12 = vpop.f32.mrb[15].mxu1 }
 0x15b   :  { %1359 = vmatpush3.bf16.msra.mxu0 %v1920_v51  ;;  %v1184_v51 = vld [vmem:[%s2074_s5] ss:$0 sm:$0xff]  ;;  %s1513_s5 = smov [#allocation2]  }
 0x15c   :  { %1360 = vmatprep.subr.bf16.mxu0 %v1933_v42  ;;  %s1097_s25 = sshll.u32 %s1513_s5, 4  ;;  %s1098_s25 = int_to_ptr.vmem [resolvable:$true] %s1097_s25 }
 0x15d   :  { %s1462_s26 = scalar_lea.vmem %s1098_s25, 32  ;;  %p1467_p1 = scmp.lt.s32.totalorder %s1098_s25, %s1098_s25 }
 0x15e   :  { %p1463_p0 = scmp.ne.s32.totalorder %s1098_s25, %s1462_s26  ;;  %p1468_p2 = scmp.lt.s32.totalorder %s1462_s26, %s1462_s26 }
 0x15f   :  { %1361 = vmatpush3.bf16.msra.mxu0 %v1945_v44 }
 0x160   :  { %p1469_p3 = por %p1468_p2, %p1467_p1 }
 0x162   :  { %1038 = vmatmul.mubr.bf16.vlgmr.msra.gmra.mrb[16].mxu0 %v883_v27  ;;  %p1470_p4 = pnand %p1469_p3, %p1463_p0 }
 0x1f5   :  { %v824_v14 = vpop.f32.mrb[8].mxu0 }
 0x1f6   :  { %v825_v42 = vadd.f32 %v1184_v51, %v824_v14  ;;  %v1377_v1 = vpop.f32.mrb[9].mxu0 }
 0x1f7   :  { %v827_v16 = vpop.f32.mrb[10].mxu0 }
 0x1f8   :  { %830 = vst [vmem:[#allocation2] sm:$0x3] %v825_v42  ;;  %v1378_v44 = vpop.f32.mrb[11].mxu0 }
 0x215   :  { %v1318_v20 = vpop.f32.mrb[12].mxu0 }
 0x216   :  { %v1319_v22 = vpop.f32.mrb[13].mxu0 }
 0x217   :  { %v1320_v24 = vadd.f32 %v1319_v22, %v1318_v20  ;;  %v1321_v26 = vpop.f32.mrb[14].mxu0 }
 0x218   :  { %v1322_v31 = vpop.f32.mrb[15].mxu0 }
 0x219   :  { %v960_v35 = vadd.f32 %v1320_v24, %v920_v18 }
 0x21b   :  { %v1000_v46 = vadd.f32 %v1342_v57, %v960_v35 }
 0x235   :  { %v1362_v52 = vpop.f32.mrb[16].mxu0 }
 0x236   :  { %v1363_v54 = vpop.f32.mrb[17].mxu0 }
 0x237   :  { %v1364_v56 = vadd.f32 %v1363_v54, %v1362_v52  ;;  %v1365_v58 = vpop.f32.mrb[18].mxu0 }
 0x238   :  { %v1366_v59 = vpop.f32.mrb[19].mxu0 }
 0x239   :  { %v1040_v60 = vadd.f32 %v1364_v56, %v1000_v46 }
 0x23b   :  { %v1045_v61 = vmax.f32 %v1040_v60, 0.0 }
 0x23d   :  { %v1046_v62 = vpack.c.bf16 %v1045_v61, %v1045_v61 }
 0x23f   :  { %1384 = vmatmul.mubr.msk.bf16.vlgmr.msra.gmra.mrb[16].mxu1 %vm786_vm1, %v1046_v62 }
 0x240   :  { %1473 = shalt.err (!%p1470_p4)
}
 0x241   :  { %s1474_s29 = scalar_lea.hbm %s2075_s6, 32 }
 0x242   :  { %p1475_p5 = scmp.ne.s32.totalorder %s2075_s6, %s1474_s29  ;;  %p1478_p6 = scmp.lt.u32.totalorder %s1474_s29, %s2075_s6 }
 0x244   :  { %p1480_p7 = pnand %p1478_p6, %p1475_p5 }
 0x246   :  { %1483 = shalt.err (!%p1480_p7)
}
 0x247   :  { %1100 = dma.vmem_to_hbm [thread:$0]  %s1098_s25, 32, %s2075_s6, [#allocation3]  }
 0x248   :  { %s1514_s12 = smov [#allocation4]  }
 0x249   :  { %s1107_s13 = sshll.u32 %s1514_s12, 4  ;;  %s1108_s13 = int_to_ptr.vmem [resolvable:$true] %s1107_s13 }
 0x24a   :  { %s1484_s14 = scalar_lea.vmem %s1108_s13, 32  ;;  %p1489_p9 = scmp.lt.s32.totalorder %s1108_s13, %s1108_s13 }
 0x24b   :  { %p1485_p8 = scmp.ne.s32.totalorder %s1108_s13, %s1484_s14  ;;  %p1490_p10 = scmp.lt.s32.totalorder %s1484_s14, %s1484_s14 }
 0x24d   :  { %p1491_p11 = por %p1490_p10, %p1489_p9 }
 0x24f   :  { %p1492_p12 = pnand %p1491_p11, %p1485_p8 }
 0x312   :  { %v1084_v29 = vpop.f32.mrb[16].mxu1 }
 0x313   :  { %v1085_v63 = vadd.f32 %v1184_v51, %v1084_v29  ;;  %v1385_v28 = vpop.f32.mrb[17].mxu1 }
 0x314   :  { %v1087_v33 = vpop.f32.mrb[18].mxu1 }
 0x315   :  { %1090 = vst [vmem:[#allocation4] sm:$0x3] %v1085_v63  ;;  %v1386_v34 = vpop.f32.mrb[19].mxu1 }
 0x316   :  { %1495 = shalt.err (!%p1492_p12)
}
 0x317   :  { %s1496_s6 = scalar_lea.hbm %s2076_s7, 32 }
 0x318   :  { %p1497_p13 = scmp.ne.s32.totalorder %s2076_s7, %s1496_s6  ;;  %p1500_p0 = scmp.lt.u32.totalorder %s1496_s6, %s2076_s7 }
 0x31a   :  { %p1502_p1 = pnand %p1500_p0, %p1497_p13 }
 0x31c   :  { %1505 = shalt.err (!%p1502_p1)
}
 0x31d   :  { %1110 = dma.vmem_to_hbm [thread:$0]  %s1108_s13, 32, %s2076_s7, [#allocation5]  }
 0x31e   :  { %1506 = dma.done.wait [#allocation3], 32  }
 0x31f   :  { %1507 = vsyncadd [#allocation3], 4294967264 }
 0x320   :  { %1508 = dma.done.wait [#allocation5], 32  }
 0x321   :  { %1509 = vsyncadd [#allocation5], 4294967264 }
 0x322   :  { %1117 = vsyncpa [#allocation3], 1 }
 0x323   :  { %1118 = vsyncpa [#allocation5], 1 }

</bundles_post_ra>
